<compile_context>
chip_gen: v5e
topology: v5e:2x2
jax: 0.10.0
libtpu: 0.0.40
codegen_flags: <defaults>
</compile_context>

<pallas_src>
import jax
import jax.numpy as jnp
from jax.experimental import pallas as pl
from jax.experimental.pallas import tpu as pltpu


def _round_up(a, b):
    return ((a + b - 1) // b) * b


def _make_fisher_kernel(eps, factor):
    lo = -1.0 + float(eps)
    hi = 1.0 - float(eps)
    fac = float(factor)

    def kernel(x_ref, mask_ref, o_ref):
        # x_ref:    (TN, TF) tile of the input
        # mask_ref: (1, TF)  f32 0/1 per-feature mask (broadcast over rows)
        x = x_ref[...].astype(jnp.float32)
        # clip FIRST: it also bounds the garbage in partial-edge blocks so the
        # log never produces NaN/Inf that could leak via the select.
        xc = jnp.clip(x, lo, hi)
        fisher = fac * (jnp.log(1.0 + xc) - jnp.log(1.0 - xc))
        m = mask_ref[...] != 0.0                      # (1, TF) bool, broadcasts
        o_ref[...] = jnp.where(m, fisher, x).astype(o_ref.dtype)

    return kernel


def fisher_transform(x, mask, eps=1e-6, factor=0.5):
    """x: (N, F) float; mask: (F,) bool/int -> (N, F), same dtype as x."""
    N, F = x.shape
    itemsize = jnp.dtype(x.dtype).itemsize
    sub = max(8, 32 // itemsize)          # sublane multiple: 8 f32, 16 bf16, 32 i8

    # --- VMEM budget (per in/out block, in bytes) ----------------------------
    try:
        vmem_cap = int(pltpu.get_tpu_info().vmem_capacity_bytes)
    except Exception:
        vmem_cap = 64 << 20               # conservative (v7x per-TC)
    block_bytes = max(1 << 20, vmem_cap // 12)

    # --- feature tile: prefer full row width (contiguous DMA, lane-dense) ---
    if F % 128 == 0 and F * sub * itemsize > block_bytes:
        TF = min(F, max(128, (block_bytes // (sub * itemsize)) // 128 * 128))
    else:
        TF = F                            # full dim: allowed even if F % 128 != 0

    # --- row tile: biggest sublane multiple fitting the block budget --------
    rows_cap = max(sub, (block_bytes // (TF * itemsize)) // sub * sub)
    if N <= rows_cap:
        TN = N                            # full dim -> no partial row block
        # keep >= 2 parallel grid steps when possible (2 TensorCores on v7x)
        if pl.cdiv(F, TF) < 2 and N >= 2 * sub:
            TN = _round_up(pl.cdiv(N, 2), sub)
    else:
        TN = rows_cap

    grid = (pl.cdiv(N, TN), pl.cdiv(F, TF))   # rows first: more steps -> balance

    # --- mask: normalize to 0/1 f32 (any nonzero == True), tiny host op -----
    mask2d = (jnp.asarray(mask) != 0).astype(jnp.float32).reshape(1, F)

    # --- vmem limit from actual tile bytes + headroom ------------------------
    io_bytes = TN * TF * itemsize
    needed = 2 * 2 * io_bytes + 2 * TF * 4 + (4 << 20)
    vmem_limit = int(min(max(needed, 16 << 20), (vmem_cap * 5) // 8))

    kernel = _make_fisher_kernel(eps, factor)

    out = pl.pallas_call(
        kernel,
        out_shape=jax.ShapeDtypeStruct((N, F), x.dtype),
        grid=grid,
        in_specs=[
            pl.BlockSpec((TN, TF), lambda i, j: (i, j)),   # x tile
            pl.BlockSpec((1, TF), lambda i, j: (0, j)),    # mask column block
        ],
        out_specs=pl.BlockSpec((TN, TF), lambda i, j: (i, j)),
        compiler_params=pltpu.CompilerParams(
            dimension_semantics=("parallel", "parallel"),
            vmem_limit_bytes=vmem_limit),
    )(x, mask2d)

    return out


def fisher_transform_ref(x, mask, eps=1e-6, factor=0.5):
    xf = x.astype(jnp.float32)
    xc = jnp.clip(xf, -1.0 + eps, 1.0 - eps)
    fisher = factor * jnp.log((1.0 + xc) / (1.0 - xc))
    return jnp.where(jnp.asarray(mask)[None, :] != 0, fisher, xf).astype(x.dtype)


if __name__ == "__main__":
    key = jax.random.PRNGKey(0)

    # Primary small case consistent with the module: (N, F) tabular input.
    N, F = 16, 128
    x = jax.random.uniform(key, (N, F), dtype=jnp.float32,
                           minval=-0.999, maxval=0.999)
    mask = (jnp.arange(F) % 2 == 0)     # transform every other feature

    out = jax.block_until_ready(fisher_transform(x, mask))
    ref = fisher_transform_ref(x, mask)
    assert out.shape == (N, F) and out.dtype == jnp.float32
    assert jnp.allclose(out, ref, atol=1e-5, rtol=1e-5), "mismatch vs reference"

    # Ragged / non-128 shape: exercises partial edge blocks (no host pad/slice).
    k2 = jax.random.PRNGKey(1)
    x2 = jax.random.uniform(k2, (30, 96), dtype=jnp.float32,
                            minval=-0.999, maxval=0.999)
    mask2 = (jnp.arange(96) % 3 != 0)
    out2 = jax.block_until_ready(fisher_transform(x2, mask2))
    ref2 = fisher_transform_ref(x2, mask2)
    assert out2.shape == (30, 96)
    assert jnp.allclose(out2, ref2, atol=1e-5, rtol=1e-5), "ragged mismatch"

    # Integer mask with values other than 0/1 (must behave like `!= 0`).
    x3 = jax.random.uniform(jax.random.PRNGKey(2), (24, 128), dtype=jnp.float32,
                            minval=-0.999, maxval=0.999)
    mask3 = (jnp.arange(128) % 4).astype(jnp.int32)   # values 0..3
    out3 = jax.block_until_ready(fisher_transform(x3, mask3))
    ref3 = fisher_transform_ref(x3, mask3)
    assert jnp.allclose(out3, ref3, atol=1e-5, rtol=1e-5), "int-mask mismatch"

    print("KERNEL_OK")
</pallas_src>

<mosaic_0001>
module attributes {stable_mosaic.version = 11 : i64} {
  func.func @kernel(%arg0: i32, %arg1: i32, %arg2: memref<8x128xf32, #tpu.memory_space<vmem>>, %arg3: memref<1x128xf32, #tpu.memory_space<vmem>>, %arg4: memref<8x128xf32, #tpu.memory_space<vmem>>) attributes {dimension_semantics = [#tpu.dimension_semantics<parallel>, #tpu.dimension_semantics<parallel>], iteration_bounds = array<i64: 2, 1>, scalar_prefetch = 0 : i64, scratch_operands = 0 : i64, tpu.core_type = #tpu.core_type<tc>, window_params = [{transform_indices = @transform_0, window_bounds = array<i64: 8, 128>}, {transform_indices = @transform_1, window_bounds = array<i64: 1, 128>}, {transform_indices = @transform_2, window_bounds = array<i64: 8, 128>}]} {
    %c0 = arith.constant 0 : index
    %c0_0 = arith.constant 0 : index
    %0 = vector.load %arg2[%c0, %c0_0] : memref<8x128xf32, #tpu.memory_space<vmem>>, vector<8x128xf32>
    %cst = arith.constant -0.999998986 : f32
    %cst_1 = arith.constant 0.999998986 : f32
    %1 = vector.broadcast %cst : f32 to vector<8x128xf32>
    %2 = arith.maximumf %1, %0 : vector<8x128xf32>
    %3 = vector.broadcast %cst_1 : f32 to vector<8x128xf32>
    %4 = arith.minimumf %3, %2 : vector<8x128xf32>
    %cst_2 = arith.constant 1.000000e+00 : f32
    %5 = vector.broadcast %cst_2 : f32 to vector<8x128xf32>
    %6 = arith.addf %5, %4 : vector<8x128xf32>
    %7 = math.log %6 : vector<8x128xf32>
    %cst_3 = arith.constant 1.000000e+00 : f32
    %8 = vector.broadcast %cst_3 : f32 to vector<8x128xf32>
    %9 = arith.subf %8, %4 : vector<8x128xf32>
    %10 = math.log %9 : vector<8x128xf32>
    %11 = arith.subf %7, %10 : vector<8x128xf32>
    %cst_4 = arith.constant 5.000000e-01 : f32
    %12 = vector.broadcast %cst_4 : f32 to vector<8x128xf32>
    %13 = arith.mulf %12, %11 : vector<8x128xf32>
    %c0_5 = arith.constant 0 : index
    %c0_6 = arith.constant 0 : index
    %14 = vector.load %arg3[%c0_5, %c0_6] : memref<1x128xf32, #tpu.memory_space<vmem>>, vector<1x128xf32>
    %cst_7 = arith.constant 0.000000e+00 : f32
    %15 = vector.broadcast %cst_7 : f32 to vector<1x128xf32>
    %16 = arith.cmpf one, %14, %15 : vector<1x128xf32>
    %17 = vector.shape_cast %16 : vector<1x128xi1> to vector<1x128xi1>
    %18 = vector.broadcast %17 : vector<1x128xi1> to vector<8x128xi1>
    %19 = arith.select %18, %13, %0 : vector<8x128xi1>, vector<8x128xf32>
    %c0_8 = arith.constant 0 : index
    %c0_9 = arith.constant 0 : index
    %20 = vector.load %arg4[%c0_8, %c0_9] : memref<8x128xf32, #tpu.memory_space<vmem>>, vector<8x128xf32>
    tpu.vector_store %arg4[%c0_8, %c0_9], %19 {strides = array<i32>} : memref<8x128xf32, #tpu.memory_space<vmem>>, vector<8x128xf32>,
    return
  }
  func.func @transform_0(%arg0: i32, %arg1: i32) -> (i32, i32) {
    %c0_i32 = arith.constant 0 : i32
    return %arg0, %arg1 : i32, i32
  }
  func.func @transform_1(%arg0: i32, %arg1: i32) -> (i32, i32) {
    %c0_i32 = arith.constant 0 : i32
    %c0_i32_0 = arith.constant 0 : i32
    return %c0_i32, %arg1 : i32, i32
  }
  func.func @transform_2(%arg0: i32, %arg1: i32) -> (i32, i32) {
    %c0_i32 = arith.constant 0 : i32
    return %arg0, %arg1 : i32, i32
  }
}

</mosaic_0001>

<bundles_post_ra>
// kernel: tpu_custom_call.1
= control target key start
LH: loop header
LB: loop body
LE: loop exit
PB: predicated region body
PF: predicated region fallthrough
CT: control target
= control target key end

     0   :  { %7 = vsyncpa [#allocation3], 0  ;;  %s733_s0 = inlined_call_operand.hbm [shape: f32[16,128], index: 0, kind: input, shape index: {}]   ;;  %s734_s1 = inlined_call_operand.hbm [shape: f32[1,128], index: 1, kind: input, shape index: {}]   ;;  %s735_s2 = inlined_call_operand.hbm [shape: f32[16,128], index: 2, kind: output, shape index: {}]  }
   0x1   :  { %9 = vsyncpa [#allocation3 + $0x1], 0 }
   0x2   :  { %10 = vsyncpa [#allocation6], 0 }
   0x3   :  { %11 = vsyncpa [#allocation4], 0 }
   0x4   :  { %13 = vsyncpa [#allocation4 + $0x1], 0  ;;  %s584_s9 = smov 0   ;;  %s586_s10 = smov 0  }
   0x5   :  { %s588_s11 = smov 0   ;;  %s590_s12 = smov 0  }
   0x6   :  { %s592_s13 = smov 0   ;;  %s594_s14 = smov 0  }
   0x7 LB: > { %s325_s15 = sadd.s32 4294967295, %s565_s14   ;;  %s326_s16 = sadd.s32 4294967294, %s565_s14   ;;  %s565_s14 = sphi %s594_s14, %s19_s14   ;;  %s561_s13 = sphi %s592_s13, %s747_s13   ;;  %s557_s12 = sphi %s590_s12, %s746_s12   ;;  %s553_s11 = sphi %s588_s11, %s745_s11   ;;  %s549_s10 = sphi %s586_s10, %s744_s10   ;;  %s545_s9 = sphi %s584_s9, %s743_s9  }
   0x8   : > { %p53_p0 = scmp.ne.s32.totalorder %s549_s10, %s545_s9  ;;  %p618_p1 = scmp.eq.s32.totalorder %s325_s15, 0 }
   0x9   : > { %p622_p2 = scmp.eq.s32.totalorder %s325_s15, 1  ;;  %p111_p3 = scmp.eq.s32.totalorder %s326_s16, 1 }
   0xa   : > { %p628_p4 = por %p618_p1, %p53_p0  ;;  %p327_p5 = scmp.ge.s32.totalorder %s565_s14, 1 }
   0xb   : > { %p633_p6 = por %p111_p3, %p53_p0  ;;  %p118_p7 = scmp.lt.s32.totalorder %s565_s14, 3 }
   0xc   : > { %s131_s23 = sshll.u32 %s734_s1, 4  ;;  %p329_p9 = scmp.ge.s32.totalorder %s565_s14, 2  ;;  %s132_s23 = int_to_ptr.hbm [resolvable:$true] %s131_s23 }
   0xd   : > { %p641_p8 = pnand %p327_p5, %p118_p7  ;;  %s567_s25 = smov [#allocation5]  }
   0xe   : > { %s133_s26 = sshll.u32 %s567_s25, 4  ;;  %s31_s27 = sadd.s32 1, %s561_s13  ;;  %s134_s26 = int_to_ptr.vmem [resolvable:$true] %s133_s26 }
   0xf   : > { %p349_p10 = pneg %p641_p8  ;;  %p33_p12 = scmp.ge.s32.totalorder %s31_s27, 2 }
  0x10   : > { %s40_s28 = sadd.s32 1, %s553_s11  ;;  %p47_p13 = scmp.ne.s32.totalorder %s553_s11, %s549_s10 }
  0x11   : > { %p350_p11 = pnand %p349_p10, %p618_p1  ;;  %p48_p0 = scmp.eq.s32.totalorder %s565_s14, 0 }
  0x12   : > { %s749_s27 = smov (%p33_p12, %s31_s27), 0  ;;  %p663_p5 = por %p622_p2, %p47_p13 }
  0x13   : > { %352 = dma.hbm_to_vmem [thread:$0]  (!%p350_p11), %s132_s23, 16, %s134_s26, [#allocation6]  }
  0x14   : > { %p657_p3 = por %p48_p0, %p47_p13  ;;  %s35_s3 = ssub.s32 %s561_s13, %s749_s27 }
  0x15   : > { %p362_p7 = scmp.lt.s32.totalorder %s565_s14, 2  ;;  %p38_p10 = scmp.eq.s32.totalorder %s35_s3, 0 }
  0x16   : > { %s144_s4 = sand.u32 1, %s553_s11   ;;  %s331_s7 = sshll.u32 %s561_s13, 3 }
  0x17   : > { %s330_s5 = sshll.u32 %s144_s4, 3  ;;  %s153_s16 = scalar_lea.hbm %s733_s0, %s331_s7 }
  0x18   : > { %s672_s6 = scalar_select %p38_p10, %s553_s11, %s40_s28  }
  0x19   : > { %s148_s21 = scalar_lea.vmem [#allocation2], %s330_s5  ;;  %s155_s18 = sshll.u32 %s153_s16, 4  ;;  %s156_s18 = int_to_ptr.hbm [resolvable:$true] %s155_s18 }
  0x1a   : > { %s157_s22 = sshll.u32 %s148_s21, 4  ;;  %p354_p2 = pnand %p362_p7, %p657_p3  ;;  %s158_s22 = int_to_ptr.vmem [resolvable:$true] %s157_s22 }
  0x1b   : > { %s145_s23 = scalar_lea.sflag [#allocation3], %s144_s4  ;;  %166 = sbr.rel (%p641_p8) target bundleno = 58 (0x3a), region = 28 }
  0x1c   : > { %356 = dma.hbm_to_vmem [thread:$0]  (!%p354_p2), %s156_s18, 128, %s158_s22, %s145_s23  }
  0x1d   : > { %s683_s25 = sand.u32 (!%p641_p8), 1, %s549_s10  }
  0x1e   : > { %s333_s26 = sshll.u32 (!%p641_p8), %s683_s25, 3  ;;  %s169_s28 = scalar_lea.sflag (!%p641_p8), [#allocation3], %s683_s25 }
  0x1f   : > { %s172_s3 = scalar_lea.vmem (!%p641_p8), [#allocation2], %s333_s26 }
  0x20   : > { %532 = dma.done.wait (%p628_p4), %s169_s28, 128  }
  0x21   : > { %534 = vsyncadd (%p628_p4), %s169_s28, 4294967168 }
  0x22   : > { %536 = dma.done.wait (%p618_p1), [#allocation6], 16  }
  0x23   : > { %538 = vsyncadd (%p618_p1), [#allocation6], 4294967280  ;;  %v199_v0 = vld [vmem:[%s172_s3] sm:$0xff]  ;;  %v210_v4 = vld [vmem:[#allocation5] sm:$0x1]  ;;  %v568_v5 = vmov 0  }
  0x24   : > { %v336_v1 = vclamps-f32 %v199_v0, 0.999999  ;;  %vm211_vm0 = vcmp.ne.f32.partialorder %v210_v4, 0.0  ;;  %s338_s24 = sshll.u32 %s557_s12, 3  ;;  %s198_s4 = scalar_lea.vmem [#allocation7], %s333_s26 }
  0x25   : > { %v212_v6 = vsel %vm211_vm0, 1, %v568_v5  ;;  %s229_s29 = scalar_lea.hbm %s735_s2, %s338_s24  ;;  %s231_s5 = sshll.u32 %s198_s4, 4  ;;  %s232_s5 = int_to_ptr.vmem [resolvable:$true] %s231_s5 }
  0x26   : > { %v202_v2 = vadd.f32 1.0, %v336_v1  ;;  %v205_v3 = vsub.f32 1.0, %v336_v1  ;;  %v213_v10 = vperm.slane %v212_v6, 0  ;;  %s233_s7 = sshll.u32 %s229_s29, 4  ;;  %s218_s12 = scalar_lea.sflag [#allocation4], %s683_s25  ;;  %s234_s7 = int_to_ptr.hbm [resolvable:$true] %s233_s7 }
  0x27   : > { %s493_s8 = sshra.s32 %s234_s7, 4  ;;  %s499_s22 = scalar_lea.hbm %s735_s2, 16  ;;  %s494_s8 = int_to_ptr.hbm [resolvable:$true] %s493_s8 }
  0x28   : > { %415 = vlog2.f32 %v202_v2  ;;  %vm214_vm1 = vcmp.eq.s32.totalorder %v213_v10, 1  ;;  %s495_s15 = scalar_lea.hbm %s494_s8, 8  ;;  %p500_p11 = scmp.lt.s32.totalorder %s494_s8, %s735_s2 }
  0x29   : > { %417 = vlog2.f32 %v205_v3  ;;  %p496_p1 = scmp.ne.s32.totalorder %s494_s8, %s495_s15  ;;  %p501_p12 = scmp.lt.s32.totalorder %s499_s22, %s495_s15 }
  0x2b   : > { %p497_p4 = pnand %p496_p1, %p663_p5  ;;  %p502_p13 = por %p501_p12, %p500_p11 }
  0x2d   : > { %p498_p8 = pneg %p497_p4 }
  0x2e   : > { %v416_v7 = vpop.eup %415 }
  0x2f   : > { %v418_v8 = vpop.eup %417  ;;  %v204_v9 = vmul.f32 0.6931472, %v416_v7  ;;  %p503_p0 = pnand %p502_p13, %p498_p8 }
  0x30   : > { %v207_v11 = vmul.f32 0.6931472, %v418_v8 }
  0x32   : > { %v208_v12 = vsub.f32 %v204_v9, %v207_v11 }
  0x34   : > { %v209_v13 = vmul.f32 0.5, %v208_v12 }
  0x36   : > { %v215_v14 = vsel %vm214_vm1, %v209_v13, %v199_v0 }
  0x37   : > { %216 = vst [vmem:[%s198_s4] sm:$0xff] %v215_v14 }
  0x38   : > { %506 = shalt.err (!%p503_p0)
}
  0x39   : > { %347 = dma.vmem_to_hbm [thread:$0]  (%p663_p5), %s232_s5, 128, %s234_s7, %s218_s12  }
  0x3a PF: > { %s245_s25 = sand.u32 1, %s545_s9   ;;  %p358_p3 = pnand %p329_p9, %p633_p6 }
  0x3b   : > { %s246_s26 = scalar_lea.sflag [#allocation4], %s245_s25 }
  0x3c   : > { %p359_p7 = pneg %p358_p3 }
  0x3e   : > { %540 = dma.done.wait (%p359_p7), %s246_s26, 128  }
  0x3f   : > { %542 = vsyncadd (%p359_p7), %s246_s26, 4294967168  ;;  %s19_s14 = sadd.s32 1, %s565_s14   ;;  %s743_s9 = smov %s549_s10 }
  0x40   : > { %p16_p10 = scmp.ge.s32.totalorder %s19_s14, 4   ;;  %s744_s10 = smov %s553_s11 }
  0x41   : > { %s745_s11 = smov %s672_s6  ;;  %s746_s12 = smov %s561_s13 }
  0x42   : > { %s747_s13 = smov %s749_s27  ;;  %18 = sbr.rel (!%p16_p10) target bundleno = 7 (0x7), region = 78 }
  0x47   :  { %252 = vsyncpa [#allocation3], 1 }
  0x48   :  { %254 = vsyncpa [#allocation3 + $0x1], 1 }
  0x49   :  { %255 = vsyncpa [#allocation6], 1 }
  0x4a   :  { %256 = vsyncpa [#allocation4], 1 }
  0x4b   :  { %258 = vsyncpa [#allocation4 + $0x1], 1 }

</bundles_post_ra>
